<compile_context>
chip_gen: v5e
topology: v5e:2x2
jax: 0.10.0
libtpu: 0.0.40
codegen_flags: <defaults>
</compile_context>

<pallas_src>
import jax
import jax.numpy as jnp
from jax.experimental import pallas as pl
from jax.experimental.pallas import tpu as pltpu


def _frozen_bn_kernel(x_ref, sb_ref, o_ref):
    # x tile: (tr, tc).
    # sb tile: (2, tr, 1) [primary] or (2, 1, tc) [fallback];
    #   sb[0] = scale, sb[1] = shift -> broadcast against x either way.
    o_ref[...] = (x_ref[...] * sb_ref[0] + sb_ref[1]).astype(o_ref.dtype)


def _has_low_precision_vpu():
    """True on chips with a bf16 VPU (v6e / v7x); False on v5e and older."""
    try:
        kind = jax.devices()[0].device_kind.lower()
        return any(tag in kind for tag in ("v6", "v7", "7x"))
    except Exception:
        return False


def _pick_blocks(rows, cols, itemsize, target_bytes, sub):
    """Sublane/lane-aligned tile sizes targeting ~target_bytes per block."""
    # Lane (last) dim: full row if it fits the byte budget at the minimum
    # legal sublane count, else a large multiple of 128.
    row_gran = min(rows, sub)
    lane_budget = max(128, target_bytes // (row_gran * itemsize))
    if cols <= lane_budget:
        tc = cols                              # == full dim: always legal
    else:
        tc = max(128, (lane_budget // 128) * 128)

    # Sublane (second-to-last) dim: fill up to the budget, aligned to `sub`.
    rows_fit = max(1, target_bytes // (tc * itemsize))
    if rows <= rows_fit or rows <= sub:
        tr = rows                              # == full dim: always legal
    else:
        tr = max(sub, (rows_fit // sub) * sub)

    # Megacore (v7x has 2 TensorCores): if the whole array would be a single
    # block, split the row axis so the ("parallel","parallel") grid has >= 2
    # blocks to shard across cores.
    if tr == rows and tc == cols and rows >= 2 * sub:
        half = ((rows + 1) // 2 + sub - 1) // sub * sub
        tr = min(rows, max(sub, half))
    return tr, tc


def frozen_batch_norm_2d(x, weight, bias, running_mean, running_var, *,
                         eps=0.0, target_block_bytes=4 * 1024 * 1024,
                         donate_x=False):
    """x: NCHW array.  weight/bias/running_mean/running_var: shape (C,).

    eps defaults to 0.0 to match the reference module exactly (its forward
    uses running_var.rsqrt() with no eps term).  Set donate_x=True only when
    the caller actually donates x (otherwise XLA would insert a defensive
    copy and add HBM traffic).
    """
    N, C, H, W = x.shape
    hw = H * W

    # Per-channel affine, computed once in f32 (O(C) work, best numerics).
    scale = weight.astype(jnp.float32) * jax.lax.rsqrt(
        running_var.astype(jnp.float32) + eps)
    shift = bias.astype(jnp.float32) - running_mean.astype(jnp.float32) * scale

    # Keep bf16 inputs packed on chips whose VPU supports bf16; otherwise f32.
    if x.dtype == jnp.bfloat16 and _has_low_precision_vpu():
        param_dtype = jnp.bfloat16
    else:
        param_dtype = jnp.float32
    scale = scale.astype(param_dtype)
    shift = shift.astype(param_dtype)

    itemsize = jnp.dtype(x.dtype).itemsize
    sub = max(8, 32 // itemsize)   # sublane multiple: 8 f32 / 16 bf16 / 32 i8

    if hw % 128 == 0:
        # Primary layout: one (n, c) plane per row, H*W lane-dense.
        rows, cols = N * C, hw
        x2d = x.reshape(rows, cols)                       # free reshape (NCHW)
        sb = jnp.stack([jnp.tile(scale, N),               # row n*C + c -> [c]
                        jnp.tile(shift, N)]).reshape(2, rows, 1)
        sb_spec = lambda tr, tc: pl.BlockSpec((2, tr, 1), lambda i, j: (0, i, 0))
    else:
        # Lane-density fallback (e.g. 7x7 feature maps): lane dim = C*H*W so
        # stores stay unmasked full-lane; scale/shift become a lane-dense row.
        rows, cols = N, C * hw
        x2d = x.reshape(rows, cols)                       # free reshape (NCHW)
        sb = jnp.stack([jnp.repeat(scale, hw),
                        jnp.repeat(shift, hw)]).reshape(2, 1, cols)
        sb_spec = lambda tr, tc: pl.BlockSpec((2, 1, tc), lambda i, j: (0, 0, j))

    tr, tc = _pick_blocks(rows, cols, itemsize, target_block_bytes, sub)
    grid = (pl.cdiv(rows, tr), pl.cdiv(cols, tc))   # ragged edges masked

    out2d = pl.pallas_call(
        _frozen_bn_kernel,
        out_shape=jax.ShapeDtypeStruct((rows, cols), x2d.dtype),
        grid=grid,
        in_specs=[
            pl.BlockSpec((tr, tc), lambda i, j: (i, j)),   # x tile
            sb_spec(tr, tc),                               # packed scale/shift
        ],
        out_specs=pl.BlockSpec((tr, tc), lambda i, j: (i, j)),
        compiler_params=pltpu.CompilerParams(
            dimension_semantics=("parallel", "parallel"),
            # ~4 MiB tiles * double-buffered in+out ~= 16 MiB; 32 MiB is a
            # safe ceiling on v5e/v6e and leaves headroom on v7x (64 MiB).
            vmem_limit_bytes=32 * 1024 * 1024,
        ),
        input_output_aliases=({0: 0} if donate_x else {}),
    )(x2d, sb)

    # Free reshape back to NCHW.
    return out2d.reshape(N, C, H, W)


def _reference(x, weight, bias, running_mean, running_var):
    scale = (weight * jax.lax.rsqrt(running_var)).reshape(1, -1, 1, 1)
    off = bias.reshape(1, -1, 1, 1) - running_mean.reshape(1, -1, 1, 1) * scale
    return x * scale + off


if __name__ == "__main__":
    key = jax.random.PRNGKey(0)
    kx, kw, kb, km, kv, kx2 = jax.random.split(key, 6)

    N, C = 2, 4
    weight = jax.random.normal(kw, (C,), dtype=jnp.float32)
    bias = jax.random.normal(kb, (C,), dtype=jnp.float32)
    running_mean = jax.random.normal(km, (C,), dtype=jnp.float32)
    running_var = jax.random.uniform(kv, (C,), dtype=jnp.float32,
                                     minval=0.5, maxval=2.0)

    # Case 1: primary lane-dense layout (H*W = 256, a 128-multiple).
    x = jax.random.normal(kx, (N, C, 16, 16), dtype=jnp.float32)
    y = jax.block_until_ready(
        frozen_batch_norm_2d(x, weight, bias, running_mean, running_var))
    y_ref = _reference(x, weight, bias, running_mean, running_var)
    assert y.shape == x.shape and y.dtype == x.dtype
    assert jnp.allclose(y, y_ref, atol=1e-5, rtol=1e-5)

    # Case 2: lane-density fallback layout (7x7 feature map, H*W = 49).
    x7 = jax.random.normal(kx2, (N, C, 7, 7), dtype=jnp.float32)
    y7 = jax.block_until_ready(
        frozen_batch_norm_2d(x7, weight, bias, running_mean, running_var))
    y7_ref = _reference(x7, weight, bias, running_mean, running_var)
    assert y7.shape == x7.shape and y7.dtype == x7.dtype
    assert jnp.allclose(y7, y7_ref, atol=1e-5, rtol=1e-5)

    print("KERNEL_OK")
</pallas_src>

<mosaic_0001>
module attributes {stable_mosaic.version = 11 : i64} {
  func.func @_frozen_bn_kernel(%arg0: i32, %arg1: i32, %arg2: memref<8x256xf32, #tpu.memory_space<vmem>>, %arg3: memref<2x8x1xf32, #tpu.memory_space<vmem>>, %arg4: memref<8x256xf32, #tpu.memory_space<vmem>>) attributes {dimension_semantics = [#tpu.dimension_semantics<parallel>, #tpu.dimension_semantics<parallel>], iteration_bounds = array<i64: 1, 1>, scalar_prefetch = 0 : i64, scratch_operands = 0 : i64, tpu.core_type = #tpu.core_type<tc>, window_params = [{transform_indices = @transform_0, window_bounds = array<i64: 8, 256>}, {transform_indices = @transform_1, window_bounds = array<i64: 2, 8, 1>}, {transform_indices = @transform_2, window_bounds = array<i64: 8, 256>}]} {
    %c0 = arith.constant 0 : index
    %c0_0 = arith.constant 0 : index
    %0 = vector.load %arg2[%c0, %c0_0] : memref<8x256xf32, #tpu.memory_space<vmem>>, vector<8x256xf32>
    %c0_1 = arith.constant 0 : index
    %c0_2 = arith.constant 0 : index
    %c0_3 = arith.constant 0 : index
    %1 = vector.load %arg3[%c0_1, %c0_2, %c0_3] : memref<2x8x1xf32, #tpu.memory_space<vmem>>, vector<1x8x1xf32>
    %2 = vector.shape_cast %1 : vector<1x8x1xf32> to vector<8x1xf32>
    %3 = vector.broadcast %2 : vector<8x1xf32> to vector<8x256xf32>
    %4 = arith.mulf %0, %3 : vector<8x256xf32>
    %c1 = arith.constant 1 : index
    %c0_4 = arith.constant 0 : index
    %c0_5 = arith.constant 0 : index
    %5 = vector.load %arg3[%c1, %c0_4, %c0_5] : memref<2x8x1xf32, #tpu.memory_space<vmem>>, vector<1x8x1xf32>
    %6 = vector.shape_cast %5 : vector<1x8x1xf32> to vector<8x1xf32>
    %7 = vector.broadcast %6 : vector<8x1xf32> to vector<8x256xf32>
    %8 = arith.addf %4, %7 : vector<8x256xf32>
    %c0_6 = arith.constant 0 : index
    %c0_7 = arith.constant 0 : index
    %9 = vector.load %arg4[%c0_6, %c0_7] : memref<8x256xf32, #tpu.memory_space<vmem>>, vector<8x256xf32>
    tpu.vector_store %arg4[%c0_6, %c0_7], %8 {strides = array<i32>} : memref<8x256xf32, #tpu.memory_space<vmem>>, vector<8x256xf32>,
    return
  }
  func.func @transform_0(%arg0: i32, %arg1: i32) -> (i32, i32) {
    %c0_i32 = arith.constant 0 : i32
    return %arg0, %arg1 : i32, i32
  }
  func.func @transform_1(%arg0: i32, %arg1: i32) -> (i32, i32, i32) {
    %c0_i32 = arith.constant 0 : i32
    %c0_i32_0 = arith.constant 0 : i32
    %c0_i32_1 = arith.constant 0 : i32
    return %c0_i32, %arg0, %c0_i32_0 : i32, i32, i32
  }
  func.func @transform_2(%arg0: i32, %arg1: i32) -> (i32, i32) {
    %c0_i32 = arith.constant 0 : i32
    return %arg0, %arg1 : i32, i32
  }
}

</mosaic_0001>

<bundles_post_ra>
// kernel: tpu_custom_call.1
= control target key start
LH: loop header
LB: loop body
LE: loop exit
PB: predicated region body
PF: predicated region fallthrough
CT: control target
= control target key end

     0   :  { %s111_s0 = inlined_call_operand.vmem [shape: f32[8,256], index: 0, kind: input, shape index: {}]   ;;  %s112_s1 = inlined_call_operand.vmem [shape: f32[2,8,1], index: 1, kind: input, shape index: {}]   ;;  %s113_s2 = inlined_call_operand.hbm [shape: f32[8,256], index: 2, kind: output, shape index: {}]  }
   0x1   :  { %v14_v0 = vld [vmem:[%s112_s1] sm:$0xff] }
   0x2   :  { %7 = vsyncpa [#allocation3], 0  ;;  %v79_v1 = vmov 0   ;;  %v49_v2 = vld [vmem:[%s112_s1 + $0x8] sm:$0xff]  ;;  %v12_v4 = vld [vmem:[%s111_s0] sm:$0xff]  ;;  %s80_s17 = smov [#allocation2]  }
   0x3   :  { %52 = vset.pattern.permute.xlu0 %v79_v1  ;;  %v13_v5 = vld [vmem:[%s111_s0 + $0x8] sm:$0xff]  ;;  %s38_s18 = sshll.u32 %s80_s17, 4  ;;  %s40_s21 = sshll.u32 %s113_s2, 4  ;;  %s39_s18 = int_to_ptr.vmem [resolvable:$true] %s38_s18  ;;  %s41_s21 = int_to_ptr.hbm [resolvable:$true] %s40_s21 }
   0x4   :  { %17 = vperm.xlu0 %52, %v14_v0  }
   0xc   :  { %26 = vperm.xlu0 %52, %v49_v2  }
  0x76   :  { %v18_v3 = vpop.permute.xlu0 %17 }
  0x77   :  { %v20_v6 = vmul.f32 %v18_v3, %v12_v4  ;;  %v21_v7 = vmul.f32 %v18_v3, %v13_v5 }
  0x7e   :  { %v27_v8 = vpop.permute.xlu0 %26 }
  0x7f   :  { %v29_v9 = vadd.f32 %v27_v8, %v20_v6  ;;  %v30_v10 = vadd.f32 %v27_v8, %v21_v7 }
  0x81   :  { %31 = vst [vmem:[#allocation2] sm:$0xff] %v29_v9 }
  0x82   :  { %32 = vst [vmem:[#allocation2 + $0x8] sm:$0xff] %v30_v10 }
  0x83   :  { %43 = dma.vmem_to_hbm [thread:$0]  %s39_s18, 256, %s41_s21, [#allocation3]  }
  0x84   :  { %77 = dma.done.wait [#allocation3], 256  }
  0x85   :  { %78 = vsyncadd [#allocation3], 4294967040 }
  0x86   :  { %48 = vsyncpa [#allocation3], 1 }

</bundles_post_ra>
